<compile_context>
chip_gen: v7x
topology: tpu7x:2x2x1
jax: 0.10.0
libtpu: 0.0.40
codegen_flags: <defaults>
</compile_context>

<pallas_src>
from functools import partial

import jax
import jax.numpy as jnp
from jax.experimental import pallas as pl
from jax.experimental.pallas import tpu as pltpu


def _round_up(x, m):
    return (x + m - 1) // m * m


# ----------------------------------------------------------------------------
# Pallas kernel: 3-layer MLP head of the Discriminator (one batch tile)
#   l1    = sigmoid(attr @ W1a + user @ W1u + b1)
#   l2    = sigmoid(l1 @ W2 + b2)
#   logit = l2 @ W3 + b3
# ----------------------------------------------------------------------------
def _disc_mlp_kernel(attr_ref, user_ref, w1a_ref, w1u_ref, b1_ref,
                     w2_ref, b2_ref, w3_ref, b3_ref, logit_ref):
    pre1 = (jnp.dot(attr_ref[...], w1a_ref[...],
                    preferred_element_type=jnp.float32)
            + jnp.dot(user_ref[...], w1u_ref[...],
                      preferred_element_type=jnp.float32)
            + b1_ref[...])
    l1 = jax.nn.sigmoid(pre1).astype(jnp.bfloat16)

    pre2 = (jnp.dot(l1, w2_ref[...], preferred_element_type=jnp.float32)
            + b2_ref[...])
    l2 = jax.nn.sigmoid(pre2).astype(jnp.bfloat16)

    logit = (jnp.dot(l2, w3_ref[...], preferred_element_type=jnp.float32)
             + b3_ref[...])
    logit_ref[...] = logit.astype(logit_ref.dtype)


def _disc_mlp(attr_feat, user_emb, w1a, w1u, b1, w2, b2, w3, b3,
              *, tb_max=512):
    """Batch-tiled Pallas call. Returns the (B, user_dim) logits in f32."""
    B, A = attr_feat.shape
    Du = user_emb.shape[1]
    U = w3.shape[1]

    # Tile size: multiple of 16 (bf16 sublane packing); large batches use
    # 512-row tiles to amortize the ~0.35 us per-grid-step overhead.
    TB = min(tb_max, _round_up(B, 16))
    Bp = _round_up(B, TB)
    if Bp != B:
        pad = Bp - B
        attr_feat = jnp.pad(attr_feat, ((0, pad), (0, 0)))
        user_emb = jnp.pad(user_emb, ((0, pad), (0, 0)))
    n_blocks = Bp // TB

    def resident(a):
        # Weights/biases: one DMA, stays VMEM-resident across grid steps.
        return pl.BlockSpec(a.shape, lambda i: (0, 0))

    logit = pl.pallas_call(
        _disc_mlp_kernel,
        out_shape=jax.ShapeDtypeStruct((Bp, U), jnp.float32),
        grid=(n_blocks,),
        in_specs=[
            pl.BlockSpec((TB, A), lambda i: (i, 0)),
            pl.BlockSpec((TB, Du), lambda i: (i, 0)),
            resident(w1a), resident(w1u), resident(b1),
            resident(w2), resident(b2),
            resident(w3), resident(b3),
        ],
        out_specs=pl.BlockSpec((TB, U), lambda i: (i, 0)),
        compiler_params=pltpu.CompilerParams(
            dimension_semantics=("parallel",)),
    )(attr_feat, user_emb, w1a, w1u, b1, w2, b2, w3, b3)
    return logit[:B]


@partial(jax.jit, static_argnames=("attr_num", "attr_dim"))
def _discriminator_forward(params, attrId, user_emb, *, attr_num, attr_dim):
    # attr = Embedding(attrId.long().view(-1, 18)) -- gather stays in XLA
    # (tiny 2*attrNum x attrDim bf16 table); no concatenated emb is built.
    ids = attrId.astype(jnp.int32).reshape(-1, 18)
    attr = jnp.take(params["emb_table"], ids, axis=0)        # (B, 18, attrDim)
    attr_feat = attr.reshape(-1, attr_num * attr_dim)         # (B, attrNum*attrDim)
    user_bf16 = user_emb.astype(jnp.bfloat16)

    logit = _disc_mlp(attr_feat, user_bf16,
                      params["w1_attr"], params["w1_user"], params["b1"],
                      params["w2"], params["b2"],
                      params["w3"], params["b3"])
    prob = jax.nn.sigmoid(logit)
    return prob, logit


# ----------------------------------------------------------------------------
# Discriminator module (parameters built deterministically in-script)
# ----------------------------------------------------------------------------
class Discriminator:
    """JAX/Pallas port of the PyTorch Discriminator (forward pass only)."""

    def __init__(self, attributes_num, attribute_dim, hide_dim, user_dim, key):
        self.attrNum = attributes_num
        self.attrDim = attribute_dim
        self.hideDim = hide_dim
        self.userDim = user_dim

        in_attr = attributes_num * attribute_dim
        in_dim = in_attr + user_dim
        ks = jax.random.split(key, 7)

        # nn.Embedding(2 * attributes_num, attribute_dim); stored bf16 so the
        # gathered features enter the kernel at half the DMA cost.
        emb_table = jax.random.normal(
            ks[0], (2 * attributes_num, attribute_dim), jnp.float32)

        # nn.Linear init: U(-1/sqrt(fan_in), 1/sqrt(fan_in)); weights stored
        # (in, out) so the kernel computes y = x @ W + b (== PyTorch's
        # x @ W.T + b with W of shape (out, in)).
        def lin(kw, kb, fan_in, fan_out):
            bound = 1.0 / (fan_in ** 0.5)
            w = jax.random.uniform(kw, (fan_in, fan_out), jnp.float32,
                                   -bound, bound)
            b = jax.random.uniform(kb, (1, fan_out), jnp.float32,
                                   -bound, bound)
            return w, b

        w1, b1 = lin(ks[1], ks[2], in_dim, hide_dim)
        w2, b2 = lin(ks[3], ks[4], hide_dim, hide_dim)
        w3, b3 = lin(ks[5], ks[6], hide_dim, user_dim)

        self.params = {
            "emb_table": emb_table.astype(jnp.bfloat16),
            # W1 split into attr / user halves -> concat is folded into the
            # kernel as two MXU partial sums.
            "w1_attr": w1[:in_attr].astype(jnp.bfloat16),
            "w1_user": w1[in_attr:].astype(jnp.bfloat16),
            "b1": b1,                                   # biases stay f32
            "w2": w2.astype(jnp.bfloat16), "b2": b2,
            "w3": w3.astype(jnp.bfloat16), "b3": b3,
        }

    def __call__(self, attrId, user_emb):
        return _discriminator_forward(self.params, attrId, user_emb,
                                      attr_num=self.attrNum,
                                      attr_dim=self.attrDim)


# ----------------------------------------------------------------------------
if __name__ == "__main__":
    key = jax.random.PRNGKey(0)
    k_param, k_attr, k_user = jax.random.split(key, 3)

    # attributes_num is forced to 18 by `.view(-1, 18)` in the reference.
    attributes_num = 18
    attribute_dim = 8
    hide_dim = 32
    user_dim = 16
    batch = 2

    disc = Discriminator(attributes_num, attribute_dim, hide_dim, user_dim,
                         k_param)

    # attrId: per-attribute index into the 2*attrNum embedding table.
    attrId = jax.random.randint(k_attr, (batch, attributes_num), 0,
                                2 * attributes_num, dtype=jnp.int32)
    user_emb = jax.random.normal(k_user, (batch, user_dim), jnp.float32)

    D_prob, D_logit = disc(attrId, user_emb)
    jax.block_until_ready(D_prob)
    jax.block_until_ready(D_logit)

    assert D_prob.shape == (batch, user_dim)
    assert D_logit.shape == (batch, user_dim)
    assert bool(jnp.all(jnp.isfinite(D_logit)))
    assert bool(jnp.all((D_prob >= 0.0) & (D_prob <= 1.0)))

    print("KERNEL_OK")
</pallas_src>

<mosaic_0001>
module attributes {stable_mosaic.version = 11 : i64} {
  func.func @_disc_mlp_kernel(%arg0: i32, %arg1: memref<16x144xbf16, #tpu.memory_space<vmem>>, %arg2: memref<16x16xbf16, #tpu.memory_space<vmem>>, %arg3: memref<144x32xbf16, #tpu.memory_space<vmem>>, %arg4: memref<16x32xbf16, #tpu.memory_space<vmem>>, %arg5: memref<1x32xf32, #tpu.memory_space<vmem>>, %arg6: memref<32x32xbf16, #tpu.memory_space<vmem>>, %arg7: memref<1x32xf32, #tpu.memory_space<vmem>>, %arg8: memref<32x16xbf16, #tpu.memory_space<vmem>>, %arg9: memref<1x16xf32, #tpu.memory_space<vmem>>, %arg10: memref<16x16xf32, #tpu.memory_space<vmem>>) attributes {dimension_semantics = [#tpu.dimension_semantics<parallel>], iteration_bounds = array<i64: 1>, scalar_prefetch = 0 : i64, scratch_operands = 0 : i64, tpu.core_type = #tpu.core_type<tc>, window_params = [{transform_indices = @transform_0, window_bounds = array<i64: 16, 144>}, {transform_indices = @transform_1, window_bounds = array<i64: 16, 16>}, {pipeline_mode = #tpu.pipeline_mode<synchronous>, transform_indices = @transform_2, window_bounds = array<i64: 144, 32>}, {pipeline_mode = #tpu.pipeline_mode<synchronous>, transform_indices = @transform_3, window_bounds = array<i64: 16, 32>}, {pipeline_mode = #tpu.pipeline_mode<synchronous>, transform_indices = @transform_4, window_bounds = array<i64: 1, 32>}, {pipeline_mode = #tpu.pipeline_mode<synchronous>, transform_indices = @transform_5, window_bounds = array<i64: 32, 32>}, {pipeline_mode = #tpu.pipeline_mode<synchronous>, transform_indices = @transform_6, window_bounds = array<i64: 1, 32>}, {pipeline_mode = #tpu.pipeline_mode<synchronous>, transform_indices = @transform_7, window_bounds = array<i64: 32, 16>}, {pipeline_mode = #tpu.pipeline_mode<synchronous>, transform_indices = @transform_8, window_bounds = array<i64: 1, 16>}, {transform_indices = @transform_9, window_bounds = array<i64: 16, 16>}]} {
    %c0 = arith.constant 0 : index
    %c0_0 = arith.constant 0 : index
    %0 = vector.load %arg1[%c0, %c0_0] : memref<16x144xbf16, #tpu.memory_space<vmem>>, vector<16x144xbf16>
    %c0_1 = arith.constant 0 : index
    %c0_2 = arith.constant 0 : index
    %1 = vector.load %arg3[%c0_1, %c0_2] : memref<144x32xbf16, #tpu.memory_space<vmem>>, vector<144x32xbf16>
    %cst = arith.constant dense<0.000000e+00> : vector<16x32xf32>
    %2 = tpu.matmul %0, %1, %cst {dimension_numbers = #tpu.dot_dimension_numbers<[1], [0], [0], [1], [0, 0, 1, 1], [], []>} : vector<16x144xbf16>, vector<144x32xbf16>, vector<16x32xf32> -> vector<16x32xf32>
    %c0_3 = arith.constant 0 : index
    %c0_4 = arith.constant 0 : index
    %3 = vector.load %arg2[%c0_3, %c0_4] : memref<16x16xbf16, #tpu.memory_space<vmem>>, vector<16x16xbf16>
    %c0_5 = arith.constant 0 : index
    %c0_6 = arith.constant 0 : index
    %4 = vector.load %arg4[%c0_5, %c0_6] : memref<16x32xbf16, #tpu.memory_space<vmem>>, vector<16x32xbf16>
    %cst_7 = arith.constant dense<0.000000e+00> : vector<16x32xf32>
    %5 = tpu.matmul %3, %4, %cst_7 {dimension_numbers = #tpu.dot_dimension_numbers<[1], [0], [0], [1], [0, 0, 1, 1], [], []>} : vector<16x16xbf16>, vector<16x32xbf16>, vector<16x32xf32> -> vector<16x32xf32>
    %6 = arith.addf %2, %5 : vector<16x32xf32>
    %c0_8 = arith.constant 0 : index
    %c0_9 = arith.constant 0 : index
    %7 = vector.load %arg5[%c0_8, %c0_9] : memref<1x32xf32, #tpu.memory_space<vmem>>, vector<1x32xf32>
    %8 = vector.broadcast %7 : vector<1x32xf32> to vector<16x32xf32>
    %9 = arith.addf %6, %8 : vector<16x32xf32>
    %10 = arith.negf %9 : vector<16x32xf32>
    %11 = math.exp %10 : vector<16x32xf32>
    %cst_10 = arith.constant 1.000000e+00 : f32
    %12 = vector.broadcast %cst_10 : f32 to vector<16x32xf32>
    %13 = arith.addf %12, %11 : vector<16x32xf32>
    %14 = arith.divf %12, %13 : vector<16x32xf32>
    %15 = arith.truncf %14 : vector<16x32xf32> to vector<16x32xbf16>
    %c0_11 = arith.constant 0 : index
    %c0_12 = arith.constant 0 : index
    %16 = vector.load %arg6[%c0_11, %c0_12] : memref<32x32xbf16, #tpu.memory_space<vmem>>, vector<32x32xbf16>
    %cst_13 = arith.constant dense<0.000000e+00> : vector<16x32xf32>
    %17 = tpu.matmul %15, %16, %cst_13 {dimension_numbers = #tpu.dot_dimension_numbers<[1], [0], [0], [1], [0, 0, 1, 1], [], []>} : vector<16x32xbf16>, vector<32x32xbf16>, vector<16x32xf32> -> vector<16x32xf32>
    %c0_14 = arith.constant 0 : index
    %c0_15 = arith.constant 0 : index
    %18 = vector.load %arg7[%c0_14, %c0_15] : memref<1x32xf32, #tpu.memory_space<vmem>>, vector<1x32xf32>
    %19 = vector.broadcast %18 : vector<1x32xf32> to vector<16x32xf32>
    %20 = arith.addf %17, %19 : vector<16x32xf32>
    %21 = arith.negf %20 : vector<16x32xf32>
    %22 = math.exp %21 : vector<16x32xf32>
    %cst_16 = arith.constant 1.000000e+00 : f32
    %23 = vector.broadcast %cst_16 : f32 to vector<16x32xf32>
    %24 = arith.addf %23, %22 : vector<16x32xf32>
    %25 = arith.divf %23, %24 : vector<16x32xf32>
    %26 = arith.truncf %25 : vector<16x32xf32> to vector<16x32xbf16>
    %c0_17 = arith.constant 0 : index
    %c0_18 = arith.constant 0 : index
    %27 = vector.load %arg8[%c0_17, %c0_18] : memref<32x16xbf16, #tpu.memory_space<vmem>>, vector<32x16xbf16>
    %cst_19 = arith.constant dense<0.000000e+00> : vector<16x16xf32>
    %28 = tpu.matmul %26, %27, %cst_19 {dimension_numbers = #tpu.dot_dimension_numbers<[1], [0], [0], [1], [0, 0, 1, 1], [], []>} : vector<16x32xbf16>, vector<32x16xbf16>, vector<16x16xf32> -> vector<16x16xf32>
    %c0_20 = arith.constant 0 : index
    %c0_21 = arith.constant 0 : index
    %29 = vector.load %arg9[%c0_20, %c0_21] : memref<1x16xf32, #tpu.memory_space<vmem>>, vector<1x16xf32>
    %30 = vector.broadcast %29 : vector<1x16xf32> to vector<16x16xf32>
    %31 = arith.addf %28, %30 : vector<16x16xf32>
    %c0_22 = arith.constant 0 : index
    %c0_23 = arith.constant 0 : index
    %32 = vector.load %arg10[%c0_22, %c0_23] : memref<16x16xf32, #tpu.memory_space<vmem>>, vector<16x16xf32>
    tpu.vector_store %arg10[%c0_22, %c0_23], %31 {strides = array<i32>} : memref<16x16xf32, #tpu.memory_space<vmem>>, vector<16x16xf32>,
    return
  }
  func.func @transform_0(%arg0: i32) -> (i32, i32) {
    %c0_i32 = arith.constant 0 : i32
    %c0_i32_0 = arith.constant 0 : i32
    return %arg0, %c0_i32 : i32, i32
  }
  func.func @transform_1(%arg0: i32) -> (i32, i32) {
    %c0_i32 = arith.constant 0 : i32
    %c0_i32_0 = arith.constant 0 : i32
    return %arg0, %c0_i32 : i32, i32
  }
  func.func @transform_2(%arg0: i32) -> (i32, i32) {
    %c0_i32 = arith.constant 0 : i32
    %c0_i32_0 = arith.constant 0 : i32
    %c0_i32_1 = arith.constant 0 : i32
    return %c0_i32, %c0_i32_0 : i32, i32
  }
  func.func @transform_3(%arg0: i32) -> (i32, i32) {
    %c0_i32 = arith.constant 0 : i32
    %c0_i32_0 = arith.constant 0 : i32
    %c0_i32_1 = arith.constant 0 : i32
    return %c0_i32, %c0_i32_0 : i32, i32
  }
  func.func @transform_4(%arg0: i32) -> (i32, i32) {
    %c0_i32 = arith.constant 0 : i32
    %c0_i32_0 = arith.constant 0 : i32
    %c0_i32_1 = arith.constant 0 : i32
    return %c0_i32, %c0_i32_0 : i32, i32
  }
  func.func @transform_5(%arg0: i32) -> (i32, i32) {
    %c0_i32 = arith.constant 0 : i32
    %c0_i32_0 = arith.constant 0 : i32
    %c0_i32_1 = arith.constant 0 : i32
    return %c0_i32, %c0_i32_0 : i32, i32
  }
  func.func @transform_6(%arg0: i32) -> (i32, i32) {
    %c0_i32 = arith.constant 0 : i32
    %c0_i32_0 = arith.constant 0 : i32
    %c0_i32_1 = arith.constant 0 : i32
    return %c0_i32, %c0_i32_0 : i32, i32
  }
  func.func @transform_7(%arg0: i32) -> (i32, i32) {
    %c0_i32 = arith.constant 0 : i32
    %c0_i32_0 = arith.constant 0 : i32
    %c0_i32_1 = arith.constant 0 : i32
    return %c0_i32, %c0_i32_0 : i32, i32
  }
  func.func @transform_8(%arg0: i32) -> (i32, i32) {
    %c0_i32 = arith.constant 0 : i32
    %c0_i32_0 = arith.constant 0 : i32
    %c0_i32_1 = arith.constant 0 : i32
    return %c0_i32, %c0_i32_0 : i32, i32
  }
  func.func @transform_9(%arg0: i32) -> (i32, i32) {
    %c0_i32 = arith.constant 0 : i32
    %c0_i32_0 = arith.constant 0 : i32
    return %arg0, %c0_i32 : i32, i32
  }
}

</mosaic_0001>

<bundles_post_ra>
// kernel: _discriminator_forward.1
= control target key start
LH: loop header
LB: loop body
LE: loop exit
PB: predicated region body
PF: predicated region fallthrough
CT: control target
= control target key end

     0   :  { %v491_v0 = vmov 0   ;;  %v492_v2 = vmov 0.0   ;;  %vm493_vm0 = vmmov 0   ;;  %vm68_vm1 = vcmask 130048   ;;  %s627_s2 = inlined_call_operand.vmem [shape: bf16[144,32], index: 2, kind: input, shape index: {}]   ;;  %s628_s3 = inlined_call_operand.vmem [shape: bf16[16,32], index: 3, kind: input, shape index: {}]   ;;  %s629_s1 = inlined_call_operand.vmem [shape: bf16[16,16], index: 1, kind: input, shape index: {}]   ;;  %s630_s0 = inlined_call_operand.vmem [shape: bf16[16,144], index: 0, kind: input, shape index: {}]   ;;  %s631_s5 = inlined_call_operand.vmem [shape: bf16[32,32], index: 5, kind: input, shape index: {}]   ;;  %s632_s4 = inlined_call_operand.vmem [shape: f32[1,32], index: 4, kind: input, shape index: {}]   ;;  %s633_s7 = inlined_call_operand.vmem [shape: bf16[32,16], index: 7, kind: input, shape index: {}]   ;;  %s634_s6 = inlined_call_operand.vmem [shape: f32[1,32], index: 6, kind: input, shape index: {}]   ;;  %s635_s8 = inlined_call_operand.vmem [shape: f32[1,16], index: 8, kind: input, shape index: {}]   ;;  %s636_s9 = inlined_call_operand.vmem [shape: f32[16,16], index: 9, kind: output, shape index: {}]  }
   0x1   :  { %179 = vmatprep.subr.bf16.mxu1 %v491_v0  ;;  %v457_v1 = vld [vmem:[%s627_s2] sm:$0xff]   ;;  %432 = vmatprep.subr.bf16.mxu0 %v492_v2  ;;  %v458_v3 = vld [vmem:[%s627_s2 + $0x8] sm:$0xff]   ;;  %v459_v4 = vld [vmem:[%s627_s2 + $0x10] sm:$0xff]   ;;  %vm265_vm2 = vcmask 261120  }
   0x2   :  { %434 = vmatprep.mubr.msk.bf16.mxu0 %vm493_vm0, %v492_v2  ;;  %180 = vmatpush1.bf16.msra.mxu1 %v457_v1  ;;  %v465_v5 = vld [vmem:[%s628_s3] sm:$0xff]   ;;  %v460_v7 = vld [vmem:[%s627_s2 + $0x18] sm:$0xff]   ;;  %v462_v10 = vld [vmem:[%s627_s2 + $0x28] sm:$0xff]  }
   0x3   :  { %181 = vmatprep.subr.bf16.mxu1 %v491_v0  ;;  %v466_v6 = vld [vmem:[%s629_s1] sm:$0xff]   ;;  %433 = vmatpush3.bf16.msra.mxu0 %v465_v5  ;;  %v463_v11 = vld [vmem:[%s627_s2 + $0x30] sm:$0xff]   ;;  %v464_v12 = vld [vmem:[%s627_s2 + $0x38] sm:$0xff]  }
   0x4   :  { %438 = vmatprep.subr.bf16.mxu0 %v492_v2  ;;  %v470_v8 = vld [vmem:[%s630_s0 + $0x4] ss:$8 sps:$4 sm:$0xff]   ;;  %v468_v14 = vld [vmem:[%s630_s0] ss:$8 sps:$4 sm:$0xff]  }
   0x5   :  { %v461_v9 = vld [vmem:[%s627_s2 + $0x20] sm:$0xff]   ;;  %410 = vmatprep.mubr.msk.bf16.mxu1 %vm68_vm1, %v470_v8  ;;  %v472_v16 = vld [vmem:[%s631_s5 + $0x8] sm:$0xff]  }
   0x6   :  { %182 = vmatpush1.bf16.msra.mxu1 %v458_v3  ;;  %435 = vmatmul.mubr.msk.bf16.vlgmr.msra.gmra.mrb[0].mxu0 %vm68_vm1, %v466_v6  ;;  %v467_v13 = vld [vmem:[%s627_s2 + $0x40] sm:$0xff]   ;;  %v474_v40 = vld [vmem:[%s633_s7 + $0x8] sm:$0xff]  }
   0x7   :  { %183 = vmatprep.subr.bf16.mxu1 %v491_v0  ;;  %442 = vmatprep.mubr.msk.bf16.mxu0 %vm493_vm0, %v492_v2  ;;  %v471_v15 = vld [vmem:[%s631_s5] sm:$0xff]  }
   0x8   :  { %439 = vmatpush3.bf16.msra.mxu0 %v471_v15  ;;  %v411_v22 = vld [vmem:[%s632_s4] ss:$0 sm:$0xff] }
   0x9   :  { %440 = vmatprep.subr.bf16.mxu0 %v492_v2  ;;  %v473_v39 = vld [vmem:[%s633_s7] sm:$0xff]  }
   0xa   :  { %184 = vmatpush1.bf16.msra.mxu1 %v459_v4  ;;  %v414_v41 = vld [vmem:[%s634_s6] ss:$0 sm:$0xff] }
   0xb   :  { %185 = vmatprep.subr.bf16.mxu1 %v491_v0  ;;  %v420_v57 = vld [vmem:[%s635_s8] ss:$0 sm:$0xff] }
   0xc   :  { %441 = vmatpush3.bf16.msra.mxu0 %v472_v16 }
   0xd   :  { %446 = vmatprep.subr.bf16.mxu0 %v492_v2 }
   0xe   :  { %186 = vmatpush1.bf16.msra.mxu1 %v460_v7 }
   0xf   :  { %187 = vmatprep.subr.bf16.mxu1 %v491_v0 }
  0x12   :  { %188 = vmatpush1.bf16.msra.mxu1 %v461_v9 }
  0x13   :  { %189 = vmatprep.subr.bf16.mxu1 %v491_v0 }
  0x16   :  { %190 = vmatpush1.bf16.msra.mxu1 %v462_v10 }
  0x17   :  { %191 = vmatprep.subr.bf16.mxu1 %v491_v0 }
  0x1a   :  { %192 = vmatpush1.bf16.msra.mxu1 %v463_v11 }
  0x1b   :  { %193 = vmatprep.subr.bf16.mxu1 %v491_v0 }
  0x1e   :  { %194 = vmatpush1.bf16.msra.mxu1 %v464_v12 }
  0x1f   :  { %195 = vmatprep.subr.bf16.mxu1 %v491_v0 }
  0x22   :  { %196 = vmatpush1.bf16.msra.mxu1 %v467_v13 }
  0x25   :  { %212 = vmatmul.mubr.bf16.vlgmr.msra.gmra.mrb[0].mxu1 %v468_v14 }
  0xd9   :  { %v106_v17 = vpop.f32.mrb[0].mxu0 }
  0xda   :  { %v436_v18 = vpop.f32.mrb[1].mxu0 }
  0xdb   :  { %v109_v19 = vpop.f32.mrb[2].mxu0 }
  0xdc   :  { %v437_v20 = vpop.f32.mrb[3].mxu0 }
  0xf8   :  { %v213_v21 = vpop.f32.mrb[0].mxu1 }
  0xf9   :  { %v214_v23 = vadd.f32 %v213_v21, %v106_v17  ;;  %v215_v24 = vpop.f32.mrb[1].mxu1 }
  0xfa   :  { %v216_v25 = vpop.f32.mrb[2].mxu1 }
  0xfb   :  { %v227_v26 = vadd.f32 %v411_v22, %v214_v23  ;;  %v217_v27 = vadd.f32 %v216_v25, %v109_v19  ;;  %v218_v28 = vpop.f32.mrb[3].mxu1 }
  0xfd   :  { %v412_v29 = vmul.f32 -1.442695, %v227_v26  ;;  %v228_v30 = vadd.f32 %v411_v22, %v217_v27 }
  0xff   :  { %475 = vpow2.f32 %v412_v29  ;;  %v413_v31 = vmul.f32 -1.442695, %v228_v30 }
 0x101   :  { %477 = vpow2.f32 %v413_v31 }
 0x109   :  { %v476_v32 = vpop.eup %475 }
 0x10a   :  { %v235_v33 = vadd.f32 1.0, %v476_v32 }
 0x10b   :  { %v478_v34 = vpop.eup %477 }
 0x10c   :  { %v236_v35 = vadd.f32 1.0, %v478_v34  ;;  %479 = vrcp.f32 %v235_v33 }
 0x10e   :  { %481 = vrcp.f32 %v236_v35 }
 0x116   :  { %v480_v36 = vpop.eup %479 }
 0x118   :  { %v482_v37 = vpop.eup %481 }
 0x119   :  { %v241_v38 = vpack.c.bf16 %v482_v37, %v480_v36 }
 0x11b   :  { %443 = vmatmul.mubr.msk.bf16.vlgmr.msra.gmra.mrb[4].mxu0 %vm265_vm2, %v241_v38 }
 0x11c   :  { %450 = vmatprep.mubr.msk.bf16.mxu0 %vm493_vm0, %v492_v2  ;;  %447 = vmatpush3.bf16.msra.mxu0 %v473_v39 }
 0x11d   :  { %448 = vmatprep.subr.bf16.mxu0 %v492_v2 }
 0x120   :  { %449 = vmatpush3.bf16.msra.mxu0 %v474_v40 }
 0x1ee   :  { %v303_v42 = vpop.f32.mrb[4].mxu0 }
 0x1ef   :  { %v304_v43 = vadd.f32 %v414_v41, %v303_v42  ;;  %v444_v44 = vpop.f32.mrb[5].mxu0 }
 0x1f0   :  { %v306_v45 = vpop.f32.mrb[6].mxu0 }
 0x1f1   :  { %v418_v46 = vmul.f32 -1.442695, %v304_v43  ;;  %v307_v47 = vadd.f32 %v414_v41, %v306_v45  ;;  %v445_v48 = vpop.f32.mrb[7].mxu0 }
 0x1f3   :  { %483 = vpow2.f32 %v418_v46  ;;  %v419_v49 = vmul.f32 -1.442695, %v307_v47 }
 0x1f5   :  { %485 = vpow2.f32 %v419_v49 }
 0x1fd   :  { %v484_v50 = vpop.eup %483 }
 0x1fe   :  { %v316_v51 = vadd.f32 1.0, %v484_v50 }
 0x1ff   :  { %v486_v52 = vpop.eup %485 }
 0x200   :  { %v317_v53 = vadd.f32 1.0, %v486_v52  ;;  %487 = vrcp.f32 %v316_v51 }
 0x202   :  { %489 = vrcp.f32 %v317_v53 }
 0x20a   :  { %v488_v54 = vpop.eup %487 }
 0x20c   :  { %v490_v55 = vpop.eup %489 }
 0x20d   :  { %v322_v56 = vpack.c.bf16 %v490_v55, %v488_v54 }
 0x20f   :  { %451 = vmatmul.mubr.msk.bf16.vlgmr.msra.gmra.mrb[8].mxu0 %vm265_vm2, %v322_v56 }
 0x2e2   :  { %v383_v58 = vpop.f32.mrb[8].mxu0 }
 0x2e3   :  { %v384_v59 = vadd.f32 %v420_v57, %v383_v58  ;;  %v452_v60 = vpop.f32.mrb[9].mxu0 }
 0x2e4   :  { %v386_v61 = vpop.f32.mrb[10].mxu0 }
 0x2e5   :  { %390 = vst.msk [vmem:[%s636_s9] sm:$0xff] %vm68_vm1, %v384_v59  ;;  %v387_v62 = vadd.f32 %v420_v57, %v386_v61  ;;  %v453_v63 = vpop.f32.mrb[11].mxu0 }
 0x2e7   :  { %391 = vst.msk [vmem:[%s636_s9 + $0x8] sm:$0xff] %vm68_vm1, %v387_v62 }

</bundles_post_ra>
